<compile_context>
chip_gen: v7x
topology: tpu7x:2x2x1
jax: 0.10.0
libtpu: 0.0.40
codegen_flags: <defaults>
</compile_context>

<pallas_src>
import functools

import jax
import jax.numpy as jnp
from jax import lax
from jax.experimental import pallas as pl
from jax.experimental.pallas import tpu as pltpu


# ----------------------------------------------------------------------------
# Kernel
# ----------------------------------------------------------------------------
def _basic_block_kernel(x_ref, w1_ref, s1_ref, b1_ref, w2_ref, s2_ref, b2_ref,
                        out_ref, *, H, WC):
    # x_ref   : (M, WC) f32, M = frames_per_step * H packed rows
    # w*_ref  : (3*WC, WC) bf16 banded block-Toeplitz conv weights (dy-major)
    # s*/b*   : (1, WC) f32 folded BN scale / bias
    # out_ref : (M, WC) f32
    M = out_ref.shape[0]

    # Row index within each H-row frame (frames are stacked contiguously along
    # the sublane axis of the block; block boundaries coincide with frame
    # boundaries, so masking rows 0 / H-1 implements the vertical zero pad).
    rif = lax.broadcasted_iota(jnp.int32, (M, 1), 0) % H
    top = rif == 0            # no row above
    bot = rif == (H - 1)      # no row below

    def conv3x3(xc_f32, w_ref):
        # Vertical halo via XLU sublane rotates + frame-boundary row masks
        # (rotation wrap-around lands only on masked rows).
        xu = jnp.where(top, 0.0, pltpu.roll(xc_f32, 1, axis=0))      # row above
        xd = jnp.where(bot, 0.0, pltpu.roll(xc_f32, M - 1, axis=0))  # row below
        # Three accumulating K=WC matmuls against the dy = 0/1/2 weight bands.
        acc = jnp.dot(xu.astype(jnp.bfloat16), w_ref[0:WC, :],
                      preferred_element_type=jnp.float32)
        acc = acc + jnp.dot(xc_f32.astype(jnp.bfloat16), w_ref[WC:2 * WC, :],
                            preferred_element_type=jnp.float32)
        acc = acc + jnp.dot(xd.astype(jnp.bfloat16), w_ref[2 * WC:3 * WC, :],
                            preferred_element_type=jnp.float32)
        return acc                                                   # (M, WC) f32

    # conv1 -> bn1 -> relu
    h = conv3x3(x_ref[...], w1_ref)
    h = jnp.maximum(h * s1_ref[...] + b1_ref[...], 0.0)

    # conv2 -> bn2
    h = conv3x3(h, w2_ref)
    h = h * s2_ref[...] + b2_ref[...]

    # residual add (downsample=None -> residual = x) + relu; x re-read from the
    # resident VMEM block instead of being kept live across both convs.
    out_ref[...] = jnp.maximum(h + x_ref[...], 0.0).astype(out_ref.dtype)


# ----------------------------------------------------------------------------
# Host-side parameter preparation
# ----------------------------------------------------------------------------
def prepare_basic_block_params(w1, bn1, w2, bn2, W, eps=1e-5):
    """Fold BN into packed per-lane scale/bias and 3x3 taps into banded weights."""
    C1 = w1.shape[-1]
    WC = W * C1

    def fold(bn):
        gamma, beta, mean, var = bn
        scale = gamma / jnp.sqrt(var + eps)
        bias = beta - mean * scale
        # packed lane index is w*C + c -> repeat per-channel params W times
        return (jnp.tile(scale, W).reshape(1, WC).astype(jnp.float32),
                jnp.tile(bias, W).reshape(1, WC).astype(jnp.float32))

    # Wc[dy*W*Cin + wi*Cin + ci, wo*Cout + co] = w[dy, wi-wo+1, ci, co]
    # (zero when |wi-wo| > 1), so horizontal zero-padding is built in.
    def banded(w_hwio):
        kh, kw, ci, co = w_hwio.shape  # (3, 3, Cin, Cout)
        wi = jnp.arange(W)[:, None]
        wo = jnp.arange(W)[None, :]
        sel = jnp.stack([(wi == (wo + dx - 1)) for dx in range(kw)], axis=0)
        sel = sel.astype(jnp.float32)                               # (3, W, W)
        m = jnp.einsum('xab,yxio->yaibo', sel, w_hwio.astype(jnp.float32))
        return m.reshape(kh * W * ci, W * co).astype(jnp.bfloat16)

    s1, b1 = fold(bn1)
    s2, b2 = fold(bn2)
    return banded(w1), s1, b1, banded(w2), s2, b2


def _pick_frames_per_step(NT, H, max_rows=1024, min_rows=256):
    """Pick frames per grid step (B). Big blocks amortize per-step overhead;
    when possible keep an even grid >= 2 so v7x's two TensorCores both get
    balanced work; otherwise (small inputs / single-TC v5e & v6e) use grid=1."""
    divs = [d for d in range(1, NT + 1) if NT % d == 0]
    multi = [d for d in divs if NT // d >= 2 and min_rows <= d * H <= max_rows]
    if multi:
        even = [d for d in multi if (NT // d) % 2 == 0]
        return max(even) if even else max(multi)
    fit = [d for d in divs if d * H <= max_rows]
    return max(fit) if fit else 1


# ----------------------------------------------------------------------------
# Packed-layout forward (use this directly between stacked BasicBlocks)
# ----------------------------------------------------------------------------
def basic_block_forward_packed(x_packed, w1c, s1, b1, w2c, s2, b2, *, H, WC,
                               frames_per_step=None):
    """x_packed: (N*T*H, W*C) float32 packed channels-last frames."""
    MH, wc = x_packed.shape
    assert wc == WC and MH % H == 0
    NT = MH // H

    B = frames_per_step if frames_per_step is not None else _pick_frames_per_step(NT, H)
    assert NT % B == 0, "frames_per_step must divide N*T"
    M = B * H

    # Explicit VMEM budget: double-buffered in/out blocks + weights + temps.
    blk_bytes = M * WC * 4
    vmem_limit = min(64 * 1024 * 1024,
                     max(16 * 1024 * 1024, 12 * blk_bytes + (4 << 20)))

    kernel = functools.partial(_basic_block_kernel, H=H, WC=WC)
    return pl.pallas_call(
        kernel,
        out_shape=jax.ShapeDtypeStruct((MH, WC), jnp.float32),
        grid=(NT // B,),
        in_specs=[
            pl.BlockSpec((M, WC), lambda i: (i, 0)),
            pl.BlockSpec((3 * WC, WC), lambda i: (0, 0)),
            pl.BlockSpec((1, WC), lambda i: (0, 0)),
            pl.BlockSpec((1, WC), lambda i: (0, 0)),
            pl.BlockSpec((3 * WC, WC), lambda i: (0, 0)),
            pl.BlockSpec((1, WC), lambda i: (0, 0)),
            pl.BlockSpec((1, WC), lambda i: (0, 0)),
        ],
        out_specs=pl.BlockSpec((M, WC), lambda i: (i, 0)),
        compiler_params=pltpu.CompilerParams(
            dimension_semantics=("parallel",),
            vmem_limit_bytes=vmem_limit),
    )(x_packed, w1c, s1, b1, w2c, s2, b2)


# ----------------------------------------------------------------------------
# NCTHW wrapper (matches the PyTorch module interface)
# ----------------------------------------------------------------------------
def basic_block_forward(x_ncthw, w1, bn1, w2, bn2, eps=1e-5,
                        frames_per_step=None):
    """x_ncthw: (N, C, T, H, W) float32.  Returns (N, C1, T, H, W) float32."""
    N, Cin, T, H, W = x_ncthw.shape
    C1 = w1.shape[-1]
    assert Cin == C1, "downsample=None requires inplanes == planes"
    NT = N * T
    WC = W * C1

    w1c, s1, b1, w2c, s2, b2 = prepare_basic_block_params(w1, bn1, w2, bn2, W, eps)

    # NOTE: for stacked BasicBlocks keep this packed layout between blocks and
    # call basic_block_forward_packed() repeatedly; transpose only once at
    # network entry/exit (each transpose is a full HBM pass of the activation).
    x_p = jnp.transpose(x_ncthw, (0, 2, 3, 4, 1)).reshape(NT * H, WC)
    x_p = x_p.astype(jnp.float32)

    out = basic_block_forward_packed(x_p, w1c, s1, b1, w2c, s2, b2,
                                     H=H, WC=WC, frames_per_step=frames_per_step)

    return jnp.transpose(out.reshape(N, T, H, W, C1), (0, 4, 1, 2, 3))


# ----------------------------------------------------------------------------
# Pure-JAX reference (same semantics as the PyTorch module, inference BN)
# ----------------------------------------------------------------------------
def reference_forward(x_ncthw, w1, bn1, w2, bn2, eps=1e-5):
    N, Cin, T, H, W = x_ncthw.shape
    C1 = w1.shape[-1]
    x2d = jnp.transpose(x_ncthw, (0, 2, 1, 3, 4)).reshape(N * T, Cin, H, W)

    def conv3x3(x, w_hwio):
        w_oihw = jnp.transpose(w_hwio, (3, 2, 0, 1))
        return lax.conv_general_dilated(
            x, w_oihw, window_strides=(1, 1), padding=((1, 1), (1, 1)),
            dimension_numbers=("NCHW", "OIHW", "NCHW"))

    def bn(x, params):
        gamma, beta, mean, var = params
        sc = (gamma / jnp.sqrt(var + eps)).reshape(1, -1, 1, 1)
        bi = (beta - mean * gamma / jnp.sqrt(var + eps)).reshape(1, -1, 1, 1)
        return x * sc + bi

    h = jnp.maximum(bn(conv3x3(x2d, w1), bn1), 0.0)
    h = bn(conv3x3(h, w2), bn2)
    h = jnp.maximum(h + x2d, 0.0)
    return jnp.transpose(h.reshape(N, T, C1, H, W), (0, 2, 1, 3, 4))


if __name__ == "__main__":
    key = jax.random.PRNGKey(0)
    N, C, T, H, W = 2, 8, 4, 16, 16          # inplanes == planes == 8, W*C=128
    ks = jax.random.split(key, 11)

    x = jax.random.normal(ks[0], (N, C, T, H, W), jnp.float32)

    # conv weights in HWIO (3, 3, Cin, Cout), no bias (matches the module)
    w1 = jax.random.normal(ks[1], (3, 3, C, C), jnp.float32) * 0.1
    w2 = jax.random.normal(ks[2], (3, 3, C, C), jnp.float32) * 0.1

    # BatchNorm3d params (inference): gamma, beta, running_mean, running_var
    bn1 = (jax.random.uniform(ks[3], (C,), jnp.float32, 0.5, 1.5),
           jax.random.normal(ks[4], (C,), jnp.float32) * 0.1,
           jax.random.normal(ks[5], (C,), jnp.float32) * 0.1,
           jax.random.uniform(ks[6], (C,), jnp.float32, 0.5, 1.5))
    bn2 = (jax.random.uniform(ks[7], (C,), jnp.float32, 0.5, 1.5),
           jax.random.normal(ks[8], (C,), jnp.float32) * 0.1,
           jax.random.normal(ks[9], (C,), jnp.float32) * 0.1,
           jax.random.uniform(ks[10], (C,), jnp.float32, 0.5, 1.5))

    out = jax.block_until_ready(basic_block_forward(x, w1, bn1, w2, bn2))
    ref = jax.block_until_ready(reference_forward(x, w1, bn1, w2, bn2))

    assert out.shape == (N, C, T, H, W)
    # bf16 MXU operands vs f32 reference -> modest tolerance; any structural
    # bug (wrong tap / roll direction / Toeplitz layout) produces O(1) errors.
    assert jnp.allclose(out, ref, atol=1e-1, rtol=2e-2), \
        f"max err {jnp.max(jnp.abs(out - ref))}"

    # TODO(synk): SE branch (se=True) and the downsample path are not exercised
    # by the default constructor args; only the default forward is implemented.
    print("KERNEL_OK")
</pallas_src>

<mosaic_0001>
module attributes {stable_mosaic.version = 11 : i64} {
  func.func @_basic_block_kernel(%arg0: i32, %arg1: memref<128x128xf32, #tpu.memory_space<vmem>>, %arg2: memref<384x128xbf16, #tpu.memory_space<vmem>>, %arg3: memref<1x128xf32, #tpu.memory_space<vmem>>, %arg4: memref<1x128xf32, #tpu.memory_space<vmem>>, %arg5: memref<384x128xbf16, #tpu.memory_space<vmem>>, %arg6: memref<1x128xf32, #tpu.memory_space<vmem>>, %arg7: memref<1x128xf32, #tpu.memory_space<vmem>>, %arg8: memref<128x128xf32, #tpu.memory_space<vmem>>) attributes {dimension_semantics = [#tpu.dimension_semantics<parallel>], iteration_bounds = array<i64: 1>, scalar_prefetch = 0 : i64, scratch_operands = 0 : i64, tpu.core_type = #tpu.core_type<tc>, window_params = [{transform_indices = @transform_0, window_bounds = array<i64: 128, 128>}, {pipeline_mode = #tpu.pipeline_mode<synchronous>, transform_indices = @transform_1, window_bounds = array<i64: 384, 128>}, {pipeline_mode = #tpu.pipeline_mode<synchronous>, transform_indices = @transform_2, window_bounds = array<i64: 1, 128>}, {pipeline_mode = #tpu.pipeline_mode<synchronous>, transform_indices = @transform_3, window_bounds = array<i64: 1, 128>}, {pipeline_mode = #tpu.pipeline_mode<synchronous>, transform_indices = @transform_4, window_bounds = array<i64: 384, 128>}, {pipeline_mode = #tpu.pipeline_mode<synchronous>, transform_indices = @transform_5, window_bounds = array<i64: 1, 128>}, {pipeline_mode = #tpu.pipeline_mode<synchronous>, transform_indices = @transform_6, window_bounds = array<i64: 1, 128>}, {transform_indices = @transform_7, window_bounds = array<i64: 128, 128>}]} {
    %0 = tpu.iota {dimensions = array<i32: 0>} : vector<128x1xi32>
    %c16_i32 = arith.constant 16 : i32
    %c0_i32 = arith.constant 0 : i32
    %1 = arith.cmpi eq, %c16_i32, %c0_i32 : i32
    %c1_i32 = arith.constant 1 : i32
    %2 = arith.select %1, %c1_i32, %c16_i32 : i32
    %3 = vector.broadcast %2 : i32 to vector<128x1xi32>
    %4 = arith.remsi %0, %3 : vector<128x1xi32>
    %c0_i32_0 = arith.constant 0 : i32
    %5 = vector.broadcast %c0_i32_0 : i32 to vector<128x1xi32>
    %6 = arith.cmpi ne, %4, %5 : vector<128x1xi32>
    %c0_i32_1 = arith.constant 0 : i32
    %7 = vector.broadcast %c0_i32_1 : i32 to vector<128x1xi32>
    %8 = arith.cmpi slt, %4, %7 : vector<128x1xi32>
    %c0_i32_2 = arith.constant 0 : i32
    %9 = arith.cmpi slt, %2, %c0_i32_2 : i32
    %10 = vector.broadcast %9 : i1 to vector<128x1xi1>
    %11 = vector.broadcast %10 : vector<128x1xi1> to vector<128x1xi1>
    %12 = arith.xori %8, %11 : vector<128x1xi1>
    %13 = arith.andi %12, %6 : vector<128x1xi1>
    %14 = vector.broadcast %2 : i32 to vector<128x1xi32>
    %15 = arith.addi %4, %14 : vector<128x1xi32>
    %16 = arith.select %13, %15, %4 : vector<128x1xi1>, vector<128x1xi32>
    %c0_i32_3 = arith.constant 0 : i32
    %17 = vector.broadcast %c0_i32_3 : i32 to vector<128x1xi32>
    %18 = arith.cmpi eq, %16, %17 : vector<128x1xi32>
    %c15_i32 = arith.constant 15 : i32
    %19 = vector.broadcast %c15_i32 : i32 to vector<128x1xi32>
    %20 = arith.cmpi eq, %16, %19 : vector<128x1xi32>
    %c0 = arith.constant 0 : index
    %c0_4 = arith.constant 0 : index
    %21 = vector.load %arg1[%c0, %c0_4] : memref<128x128xf32, #tpu.memory_space<vmem>>, vector<128x128xf32>
    %c1_i32_5 = arith.constant 1 : i32
    %22 = tpu.dynamic_rotate %21 by %c1_i32_5 dim 0 : vector<128x128xf32>, i32 -> vector<128x128xf32>
    %cst = arith.constant 0.000000e+00 : f32
    %23 = vector.shape_cast %18 : vector<128x1xi1> to vector<128x1xi1>
    %24 = vector.broadcast %23 : vector<128x1xi1> to vector<128x128xi1>
    %25 = vector.broadcast %cst : f32 to vector<128x128xf32>
    %26 = arith.select %24, %25, %22 : vector<128x128xi1>, vector<128x128xf32>
    %c127_i32 = arith.constant 127 : i32
    %27 = tpu.dynamic_rotate %21 by %c127_i32 dim 0 : vector<128x128xf32>, i32 -> vector<128x128xf32>
    %cst_6 = arith.constant 0.000000e+00 : f32
    %28 = vector.shape_cast %20 : vector<128x1xi1> to vector<128x1xi1>
    %29 = vector.broadcast %28 : vector<128x1xi1> to vector<128x128xi1>
    %30 = vector.broadcast %cst_6 : f32 to vector<128x128xf32>
    %31 = arith.select %29, %30, %27 : vector<128x128xi1>, vector<128x128xf32>
    %32 = arith.truncf %26 : vector<128x128xf32> to vector<128x128xbf16>
    %c0_7 = arith.constant 0 : index
    %c0_8 = arith.constant 0 : index
    %33 = vector.load %arg2[%c0_7, %c0_8] : memref<384x128xbf16, #tpu.memory_space<vmem>>, vector<128x128xbf16>
    %cst_9 = arith.constant dense<0.000000e+00> : vector<128x128xf32>
    %34 = tpu.matmul %32, %33, %cst_9 {dimension_numbers = #tpu.dot_dimension_numbers<[1], [0], [0], [1], [0, 0, 1, 1], [], []>} : vector<128x128xbf16>, vector<128x128xbf16>, vector<128x128xf32> -> vector<128x128xf32>
    %35 = arith.truncf %21 : vector<128x128xf32> to vector<128x128xbf16>
    %c128 = arith.constant 128 : index
    %c0_10 = arith.constant 0 : index
    %36 = vector.load %arg2[%c128, %c0_10] : memref<384x128xbf16, #tpu.memory_space<vmem>>, vector<128x128xbf16>
    %cst_11 = arith.constant dense<0.000000e+00> : vector<128x128xf32>
    %37 = tpu.matmul %35, %36, %cst_11 {dimension_numbers = #tpu.dot_dimension_numbers<[1], [0], [0], [1], [0, 0, 1, 1], [], []>} : vector<128x128xbf16>, vector<128x128xbf16>, vector<128x128xf32> -> vector<128x128xf32>
    %38 = arith.addf %34, %37 : vector<128x128xf32>
    %39 = arith.truncf %31 : vector<128x128xf32> to vector<128x128xbf16>
    %c256 = arith.constant 256 : index
    %c0_12 = arith.constant 0 : index
    %40 = vector.load %arg2[%c256, %c0_12] : memref<384x128xbf16, #tpu.memory_space<vmem>>, vector<128x128xbf16>
    %cst_13 = arith.constant dense<0.000000e+00> : vector<128x128xf32>
    %41 = tpu.matmul %39, %40, %cst_13 {dimension_numbers = #tpu.dot_dimension_numbers<[1], [0], [0], [1], [0, 0, 1, 1], [], []>} : vector<128x128xbf16>, vector<128x128xbf16>, vector<128x128xf32> -> vector<128x128xf32>
    %42 = arith.addf %38, %41 : vector<128x128xf32>
    %c0_14 = arith.constant 0 : index
    %c0_15 = arith.constant 0 : index
    %43 = vector.load %arg3[%c0_14, %c0_15] : memref<1x128xf32, #tpu.memory_space<vmem>>, vector<1x128xf32>
    %44 = vector.broadcast %43 : vector<1x128xf32> to vector<128x128xf32>
    %45 = arith.mulf %42, %44 : vector<128x128xf32>
    %c0_16 = arith.constant 0 : index
    %c0_17 = arith.constant 0 : index
    %46 = vector.load %arg4[%c0_16, %c0_17] : memref<1x128xf32, #tpu.memory_space<vmem>>, vector<1x128xf32>
    %47 = vector.broadcast %46 : vector<1x128xf32> to vector<128x128xf32>
    %48 = arith.addf %45, %47 : vector<128x128xf32>
    %cst_18 = arith.constant 0.000000e+00 : f32
    %49 = vector.broadcast %cst_18 : f32 to vector<128x128xf32>
    %50 = arith.maximumf %48, %49 : vector<128x128xf32>
    %c1_i32_19 = arith.constant 1 : i32
    %51 = tpu.dynamic_rotate %50 by %c1_i32_19 dim 0 : vector<128x128xf32>, i32 -> vector<128x128xf32>
    %cst_20 = arith.constant 0.000000e+00 : f32
    %52 = vector.shape_cast %18 : vector<128x1xi1> to vector<128x1xi1>
    %53 = vector.broadcast %52 : vector<128x1xi1> to vector<128x128xi1>
    %54 = vector.broadcast %cst_20 : f32 to vector<128x128xf32>
    %55 = arith.select %53, %54, %51 : vector<128x128xi1>, vector<128x128xf32>
    %c127_i32_21 = arith.constant 127 : i32
    %56 = tpu.dynamic_rotate %50 by %c127_i32_21 dim 0 : vector<128x128xf32>, i32 -> vector<128x128xf32>
    %cst_22 = arith.constant 0.000000e+00 : f32
    %57 = vector.shape_cast %20 : vector<128x1xi1> to vector<128x1xi1>
    %58 = vector.broadcast %57 : vector<128x1xi1> to vector<128x128xi1>
    %59 = vector.broadcast %cst_22 : f32 to vector<128x128xf32>
    %60 = arith.select %58, %59, %56 : vector<128x128xi1>, vector<128x128xf32>
    %61 = arith.truncf %55 : vector<128x128xf32> to vector<128x128xbf16>
    %c0_23 = arith.constant 0 : index
    %c0_24 = arith.constant 0 : index
    %62 = vector.load %arg5[%c0_23, %c0_24] : memref<384x128xbf16, #tpu.memory_space<vmem>>, vector<128x128xbf16>
    %cst_25 = arith.constant dense<0.000000e+00> : vector<128x128xf32>
    %63 = tpu.matmul %61, %62, %cst_25 {dimension_numbers = #tpu.dot_dimension_numbers<[1], [0], [0], [1], [0, 0, 1, 1], [], []>} : vector<128x128xbf16>, vector<128x128xbf16>, vector<128x128xf32> -> vector<128x128xf32>
    %64 = arith.truncf %50 : vector<128x128xf32> to vector<128x128xbf16>
    %c128_26 = arith.constant 128 : index
    %c0_27 = arith.constant 0 : index
    %65 = vector.load %arg5[%c128_26, %c0_27] : memref<384x128xbf16, #tpu.memory_space<vmem>>, vector<128x128xbf16>
    %cst_28 = arith.constant dense<0.000000e+00> : vector<128x128xf32>
    %66 = tpu.matmul %64, %65, %cst_28 {dimension_numbers = #tpu.dot_dimension_numbers<[1], [0], [0], [1], [0, 0, 1, 1], [], []>} : vector<128x128xbf16>, vector<128x128xbf16>, vector<128x128xf32> -> vector<128x128xf32>
    %67 = arith.addf %63, %66 : vector<128x128xf32>
    %68 = arith.truncf %60 : vector<128x128xf32> to vector<128x128xbf16>
    %c256_29 = arith.constant 256 : index
    %c0_30 = arith.constant 0 : index
    %69 = vector.load %arg5[%c256_29, %c0_30] : memref<384x128xbf16, #tpu.memory_space<vmem>>, vector<128x128xbf16>
    %cst_31 = arith.constant dense<0.000000e+00> : vector<128x128xf32>
    %70 = tpu.matmul %68, %69, %cst_31 {dimension_numbers = #tpu.dot_dimension_numbers<[1], [0], [0], [1], [0, 0, 1, 1], [], []>} : vector<128x128xbf16>, vector<128x128xbf16>, vector<128x128xf32> -> vector<128x128xf32>
    %71 = arith.addf %67, %70 : vector<128x128xf32>
    %c0_32 = arith.constant 0 : index
    %c0_33 = arith.constant 0 : index
    %72 = vector.load %arg6[%c0_32, %c0_33] : memref<1x128xf32, #tpu.memory_space<vmem>>, vector<1x128xf32>
    %73 = vector.broadcast %72 : vector<1x128xf32> to vector<128x128xf32>
    %74 = arith.mulf %71, %73 : vector<128x128xf32>
    %c0_34 = arith.constant 0 : index
    %c0_35 = arith.constant 0 : index
    %75 = vector.load %arg7[%c0_34, %c0_35] : memref<1x128xf32, #tpu.memory_space<vmem>>, vector<1x128xf32>
    %76 = vector.broadcast %75 : vector<1x128xf32> to vector<128x128xf32>
    %77 = arith.addf %74, %76 : vector<128x128xf32>
    %c0_36 = arith.constant 0 : index
    %c0_37 = arith.constant 0 : index
    %78 = vector.load %arg1[%c0_36, %c0_37] : memref<128x128xf32, #tpu.memory_space<vmem>>, vector<128x128xf32>
    %79 = arith.addf %77, %78 : vector<128x128xf32>
    %cst_38 = arith.constant 0.000000e+00 : f32
    %80 = vector.broadcast %cst_38 : f32 to vector<128x128xf32>
    %81 = arith.maximumf %79, %80 : vector<128x128xf32>
    %c0_39 = arith.constant 0 : index
    %c0_40 = arith.constant 0 : index
    %82 = vector.load %arg8[%c0_39, %c0_40] : memref<128x128xf32, #tpu.memory_space<vmem>>, vector<128x128xf32>
    tpu.vector_store %arg8[%c0_39, %c0_40], %81 {strides = array<i32>} : memref<128x128xf32, #tpu.memory_space<vmem>>, vector<128x128xf32>,
    return
  }
  func.func @transform_0(%arg0: i32) -> (i32, i32) {
    %c0_i32 = arith.constant 0 : i32
    %c0_i32_0 = arith.constant 0 : i32
    return %arg0, %c0_i32 : i32, i32
  }
  func.func @transform_1(%arg0: i32) -> (i32, i32) {
    %c0_i32 = arith.constant 0 : i32
    %c0_i32_0 = arith.constant 0 : i32
    %c0_i32_1 = arith.constant 0 : i32
    return %c0_i32, %c0_i32_0 : i32, i32
  }
  func.func @transform_2(%arg0: i32) -> (i32, i32) {
    %c0_i32 = arith.constant 0 : i32
    %c0_i32_0 = arith.constant 0 : i32
    %c0_i32_1 = arith.constant 0 : i32
    return %c0_i32, %c0_i32_0 : i32, i32
  }
  func.func @transform_3(%arg0: i32) -> (i32, i32) {
    %c0_i32 = arith.constant 0 : i32
    %c0_i32_0 = arith.constant 0 : i32
    %c0_i32_1 = arith.constant 0 : i32
    return %c0_i32, %c0_i32_0 : i32, i32
  }
  func.func @transform_4(%arg0: i32) -> (i32, i32) {
    %c0_i32 = arith.constant 0 : i32
    %c0_i32_0 = arith.constant 0 : i32
    %c0_i32_1 = arith.constant 0 : i32
    return %c0_i32, %c0_i32_0 : i32, i32
  }
  func.func @transform_5(%arg0: i32) -> (i32, i32) {
    %c0_i32 = arith.constant 0 : i32
    %c0_i32_0 = arith.constant 0 : i32
    %c0_i32_1 = arith.constant 0 : i32
    return %c0_i32, %c0_i32_0 : i32, i32
  }
  func.func @transform_6(%arg0: i32) -> (i32, i32) {
    %c0_i32 = arith.constant 0 : i32
    %c0_i32_0 = arith.constant 0 : i32
    %c0_i32_1 = arith.constant 0 : i32
    return %c0_i32, %c0_i32_0 : i32, i32
  }
  func.func @transform_7(%arg0: i32) -> (i32, i32) {
    %c0_i32 = arith.constant 0 : i32
    %c0_i32_0 = arith.constant 0 : i32
    return %arg0, %c0_i32 : i32, i32
  }
}

</mosaic_0001>

<bundles_post_ra>
// kernel: tpu_custom_call.1
= control target key start
LH: loop header
LB: loop body
LE: loop exit
PB: predicated region body
PF: predicated region fallthrough
CT: control target
= control target key end

     0   :  { %12 = vsyncpa [#allocation3], 0  ;;  %s3227_s0 = inlined_call_operand.hbm [shape: f32[128,128], index: 0, kind: input, shape index: {}]   ;;  %s3228_s1 = inlined_call_operand.hbm [shape: bf16[384,128], index: 1, kind: input, shape index: {}]   ;;  %s3229_s2 = inlined_call_operand.vmem [shape: f32[1,128], index: 2, kind: input, shape index: {}]   ;;  %s3230_s3 = inlined_call_operand.vmem [shape: f32[1,128], index: 3, kind: input, shape index: {}]   ;;  %s3231_s4 = inlined_call_operand.hbm [shape: bf16[384,128], index: 4, kind: input, shape index: {}]   ;;  %s3232_s5 = inlined_call_operand.vmem [shape: f32[1,128], index: 5, kind: input, shape index: {}]   ;;  %s3233_s6 = inlined_call_operand.vmem [shape: f32[1,128], index: 6, kind: input, shape index: {}]   ;;  %s3234_s7 = inlined_call_operand.hbm [shape: f32[128,128], index: 7, kind: output, shape index: {}]  }
   0x1   :  { %13 = vsyncpa [#allocation6], 0 }
   0x2   :  { %14 = vsyncpa [#allocation4], 0  ;;  %s2519_s24 = smov [#allocation5]   ;;  %s2425_s28 = scalar_lea.hbm %s3228_s1, 3072 }
   0x3   :  { %s32_s25 = sshll.u32 %s2519_s24, 4  ;;  %p2426_p0 = scmp.ne.s32.totalorder %s3228_s1, %s2425_s28  ;;  %s33_s25 = int_to_ptr.vmem [resolvable:$true] %s32_s25 }
   0x4   :  { %p2429_p1 = scmp.lt.u32.totalorder %s2425_s28, %s3228_s1 }
   0x6   :  { %p2431_p2 = pnand %p2429_p1, %p2426_p0 }
   0x8   :  { %2434 = shalt.err (!%p2431_p2)
}
   0x9   :  { %s2435_s10 = scalar_lea.vmem %s33_s25, 3072  ;;  %p2440_p4 = scmp.lt.s32.totalorder %s33_s25, %s33_s25 }
   0xa   :  { %p2436_p3 = scmp.ne.s32.totalorder %s33_s25, %s2435_s10  ;;  %p2441_p5 = scmp.lt.s32.totalorder %s2435_s10, %s2435_s10 }
   0xc   :  { %p2442_p6 = por %p2441_p5, %p2440_p4 }
   0xe   :  { %p2443_p7 = pnand %p2442_p6, %p2436_p3 }
  0x10   :  { %2446 = shalt.err (!%p2443_p7)
}
  0x11   :  { %s2520_s11 = smov 64   ;;  %s2521_s12 = smov 4  }
  0x12   :  { %38 = dma.hbm_to_vmem [thread:$0]  %s3228_s1, 3072, %s33_s25, [#allocation6], %s2520_s11, %s2520_s11, %s2521_s12  }
  0x13   :  { %s2522_s15 = smov [#allocation2]   ;;  %s2447_s19 = scalar_lea.hbm %s3227_s0, 2048 }
  0x14   :  { %s20_s16 = sshll.u32 %s2522_s15, 4  ;;  %p2448_p8 = scmp.ne.s32.totalorder %s3227_s0, %s2447_s19  ;;  %s21_s16 = int_to_ptr.vmem [resolvable:$true] %s20_s16 }
  0x15   :  { %p2451_p9 = scmp.lt.u32.totalorder %s2447_s19, %s3227_s0 }
  0x17   :  { %p2453_p10 = pnand %p2451_p9, %p2448_p8 }
  0x19   :  { %2456 = shalt.err (!%p2453_p10)
}
  0x1a   :  { %s2457_s24 = scalar_lea.vmem %s21_s16, 2048  ;;  %p2462_p12 = scmp.lt.s32.totalorder %s21_s16, %s21_s16 }
  0x1b   :  { %p2458_p11 = scmp.ne.s32.totalorder %s21_s16, %s2457_s24  ;;  %p2463_p13 = scmp.lt.s32.totalorder %s2457_s24, %s2457_s24 }
  0x1d   :  { %p2464_p0 = por %p2463_p13, %p2462_p12 }
  0x1f   :  { %p2465_p1 = pnand %p2464_p0, %p2458_p11 }
  0x21   :  { %2468 = shalt.err (!%p2465_p1)
}
  0x22   :  { %s2523_s1 = smov 128   ;;  %s2524_s25 = smov 8  }
  0x23   :  { %26 = dma.hbm_to_vmem [thread:$0]  %s3227_s0, 2048, %s21_s16, [#allocation3], %s2523_s1, %s2523_s1, %s2524_s25  }
  0x24   :  { %s2525_s28 = smov [#allocation7]   ;;  %s2469_s9 = scalar_lea.hbm %s3231_s4, 3072 }
  0x25   :  { %s48_s29 = sshll.u32 %s2525_s28, 4  ;;  %p2470_p2 = scmp.ne.s32.totalorder %s3231_s4, %s2469_s9  ;;  %s49_s29 = int_to_ptr.vmem [resolvable:$true] %s48_s29 }
  0x26   :  { %p2473_p3 = scmp.lt.u32.totalorder %s2469_s9, %s3231_s4 }
  0x28   :  { %p2475_p4 = pnand %p2473_p3, %p2470_p2 }
  0x2a   :  { %2478 = shalt.err (!%p2475_p4)
}
  0x2b   :  { %s2479_s17 = scalar_lea.vmem %s49_s29, 3072  ;;  %p2484_p6 = scmp.lt.s32.totalorder %s49_s29, %s49_s29 }
  0x2c   :  { %p2480_p5 = scmp.ne.s32.totalorder %s49_s29, %s2479_s17  ;;  %p2485_p7 = scmp.lt.s32.totalorder %s2479_s17, %s2479_s17 }
  0x2e   :  { %p2486_p8 = por %p2485_p7, %p2484_p6 }
  0x30   :  { %p2487_p9 = pnand %p2486_p8, %p2480_p5 }
  0x32   :  { %2490 = shalt.err (!%p2487_p9)
}
  0x33   :  { %54 = dma.hbm_to_vmem [thread:$0]  %s3231_s4, 3072, %s49_s29, [#allocation6], %s2520_s11, %s2520_s11, %s2521_s12  }
  0x34   :  { %2513 = dma.done.wait [#allocation3], 2048  }
  0x35   :  { %2514 = vsyncadd [#allocation3], 4294965248 }
  0x36   :  { %2515 = dma.done.wait [#allocation6], 6144  }
  0x37   :  { %2516 = vsyncadd [#allocation6], 4294961152  ;;  %v2361_v0 = vld [vmem:[#allocation5 + $0x40] sm:$0xff]   ;;  %v2362_v1 = vld [vmem:[#allocation5 + $0x48] sm:$0xff]   ;;  %v69_v16 = vlaneseq  ;;  %vm3239_vm2 = vmmov 1  }
  0x38   :  { %2096 = vmatprep.subr.bf16.mxu0 %v2361_v0  ;;  %v2363_v2 = vld [vmem:[#allocation5 + $0x50] sm:$0xff]   ;;  %v2364_v3 = vld [vmem:[#allocation5 + $0x58] sm:$0xff]   ;;  %v2613_v4 = vld [vmem:[#allocation2] sm:$0xff] }
  0x39   :  { %2097 = vmatpush3.bf16.msra.mxu0 %v2361_v0  ;;  %v2615_v5 = vld [vmem:[#allocation2 + $0x8] sm:$0xff]  ;;  %v2365_v7 = vld [vmem:[#allocation5 + $0x60] sm:$0xff]   ;;  %v2367_v9 = vld [vmem:[#allocation5 + $0x70] sm:$0xff]   ;;  %v2631_v20 = vshrl.u32 %v69_v16, 7  ;;  %v326_v29 = vrot.slane %v2613_v4, 7 }
  0x3a   :  { %2098 = vmatprep.subr.bf16.mxu0 %v2362_v1  ;;  %v512_v6 = vpack.c.bf16 %v2615_v5, %v2613_v4  ;;  %v2366_v8 = vld [vmem:[#allocation5 + $0x68] sm:$0xff]   ;;  %v2368_v10 = vld [vmem:[#allocation5 + $0x78] sm:$0xff]   ;;  %v2619_v11 = vld [vmem:[#allocation2 + $0x10] sm:$0xff]  ;;  %v327_v34 = vrot.slane %v2615_v5, 7 }
  0x3b   :  { %v2621_v12 = vld [vmem:[#allocation2 + $0x18] sm:$0xff]  ;;  %v2369_v13 = vld [vmem:[#allocation5] sm:$0xff]   ;;  %v2625_v15 = vld [vmem:[#allocation2 + $0x28] sm:$0xff]  ;;  %v90_v28 = vand.u32 15, %v2631_v20  ;;  %v72_v32 = vadd.s32 16, %v2631_v20  ;;  %vm3235_vm0 = vcmp.lt.s32.totalorder %v2631_v20, 1 }
  0x3c   :  { %2112 = vmatprep.mubr.bf16.mxu0 %v512_v6  ;;  %v2623_v14 = vld [vmem:[#allocation2 + $0x20] sm:$0xff]  ;;  %v513_v17 = vpack.c.bf16 %v2621_v12, %v2619_v11  ;;  %v2370_v19 = vld [vmem:[#allocation5 + $0x8] sm:$0xff]   ;;  %v2633_v21 = vld [vmem:[#allocation2 + $0x30] sm:$0xff]  ;;  %v357_v50 = vsel %vm3235_vm0, %v326_v29, %v327_v34  ;;  %v74_v52 = vadd.s32 32, %v2631_v20  ;;  %v328_v54 = vrot.slane %v2619_v11, 7 }
  0x3d   :  { %2099 = vmatpush3.bf16.msra.mxu0 %v2362_v1  ;;  %v514_v18 = vpack.c.bf16 %v2625_v15, %v2623_v14  ;;  %v2635_v22 = vld [vmem:[#allocation2 + $0x38] sm:$0xff]  ;;  %v2385_v23 = vld [vmem:[#allocation7 + $0x40] sm:$0xff]   ;;  %v2371_v24 = vld [vmem:[#allocation5 + $0x10] sm:$0xff]   ;;  %vm1984_vm1 = vcmp.ne.s32.totalorder %v90_v28, 0  ;;  %v329_v55 = vrot.slane %v2621_v12, 7  ;;  %v330_v57 = vrot.slane %v2623_v14, 7 }
  0x3e   :  { %2100 = vmatprep.subr.bf16.mxu0 %v2363_v2  ;;  %v2637_v25 = vld [vmem:[#allocation2 + $0x40] sm:$0xff]  ;;  %v2386_v26 = vld [vmem:[#allocation7 + $0x48] sm:$0xff]   ;;  %2192 = vmatprep.subr.bf16.mxu1 %v2385_v23  ;;  %v515_v30 = vpack.c.bf16 %v2635_v22, %v2633_v21  ;;  %v2372_v31 = vld [vmem:[#allocation5 + $0x18] sm:$0xff]   ;;  %v331_v58 = vrot.slane %v2625_v15, 7  ;;  %v104_v61 = vand.u32 15, %v72_v32  ;;  %v118_v62 = vand.u32 15, %v74_v52 }
  0x3f   :  { %v2639_v27 = vld [vmem:[#allocation2 + $0x48] sm:$0xff]  ;;  %2193 = vmatpush3.bf16.msra.mxu1 %v2385_v23  ;;  %v2387_v33 = vld [vmem:[#allocation7 + $0x50] sm:$0xff]   ;;  %v2649_v36 = vld [vmem:[#allocation2 + $0x78] sm:$0xff]  ;;  %v355_v63 = vsel %vm3235_vm0, %v328_v54, %v329_v55  ;;  %v356_v0 = vsel %vm3235_vm0, %v327_v34, %v328_v54  ;;  %v76_v6 = vadd.s32 48, %v2631_v20  ;;  %v82_v34 = vadd.s32 96, %v2631_v20 }
  0x40   :  { %2194 = vmatprep.subr.bf16.mxu1 %v2386_v26  ;;  %v516_v35 = vpack.c.bf16 %v2639_v27, %v2637_v25  ;;  %v341_v37 = vrot.slane %v2649_v36, 7  ;;  %v2388_v38 = vld [vmem:[#allocation7 + $0x58] sm:$0xff]   ;;  %v2653_v39 = vld [vmem:[#allocation2 + $0x50] sm:$0xff]  ;;  %v2373_v41 = vld [vmem:[#allocation5 + $0x20] sm:$0xff]   ;;  %vm1985_vm4 = vcmp.ne.s32.totalorder %v104_v61, 0  ;;  %vm1986_vm5 = vcmp.ne.s32.totalorder %v118_v62, 0 }
  0x41   :  { %2101 = vmatpush3.bf16.msra.mxu0 %v2363_v2  ;;  %v2655_v40 = vld [vmem:[#allocation2 + $0x58] sm:$0xff]  ;;  %v2657_v42 = vld [vmem:[#allocation2 + $0x60] sm:$0xff]  ;;  %v2659_v43 = vld [vmem:[#allocation2 + $0x68] sm:$0xff]  ;;  %v353_v2 = vsel %vm3235_vm0, %v330_v57, %v331_v58  ;;  %v174_v52 = vand.u32 15, %v82_v34 }
  0x42   :  { %2102 = vmatprep.subr.bf16.mxu0 %v2364_v3  ;;  %v2389_v44 = vld [vmem:[#allocation7 + $0x60] sm:$0xff]   ;;  %v517_v45 = vpack.c.bf16 %v2655_v40, %v2653_v39  ;;  %v2374_v46 = vld [vmem:[#allocation5 + $0x28] sm:$0xff]   ;;  %v518_v47 = vpack.c.bf16 %v2659_v43, %v2657_v42  ;;  %v2665_v48 = vld [vmem:[#allocation2 + $0x70] sm:$0xff]  ;;  %v358_v51 = vsel %vm3235_vm0, %v341_v37, %v326_v29 }
  0x43   :  { %2195 = vmatpush3.bf16.msra.mxu1 %v2386_v26  ;;  %v2375_v49 = vld [vmem:[#allocation5 + $0x30] sm:$0xff]   ;;  %v519_v53 = vpack.c.bf16 %v2649_v36, %v2665_v48  ;;  %v1822_v56 = vpack.c.bf16 %v357_v50, %v358_v51  ;;  %v2376_v59 = vld [vmem:[#allocation5 + $0x38] sm:$0xff]   ;;  %vm2681_vm3 = vmpackc.low %vm3239_vm2, %vm1984_vm1  ;;  %vm1990_vm13 = vcmp.ne.s32.totalorder %v174_v52, 0  ;;  %v340_v62 = vrot.slane %v2665_v48, 7 }
  0x44   :  { %2196 = vmatprep.subr.bf16.mxu1 %v2387_v33  ;;  %v2377_v1 = vld [vmem:[#allocation5 + $0x80] sm:$0xff]   ;;  %vm2700_vm6 = vmpackc.low %vm3239_vm2, %vm1985_vm4  ;;  %vm3236_vm1 = vcmp.lt.s32.totalorder %v2631_v20, 7  ;;  %v416_v52 = vrot.slane %v2639_v27, 1  ;;  %v2408_v50 = vld [vmem:[#allocation7 + $0xb8] sm:$0xff]  }
  0x45   :  { %2103 = vmatpush3.bf16.msra.mxu0 %v2364_v3  ;;  %v354_v3 = vsel %vm3235_vm0, %v329_v55, %v330_v57  ;;  %vm2707_vm7 = vmpackc.low %vm3239_vm2, %vm1986_vm5  ;;  %v2381_v55 = vld [vmem:[#allocation5 + $0xa0] sm:$0xff]  }
  0x46   :  { %2104 = vmatprep.subr.bf16.mxu0 %v2365_v7  ;;  %v1830_v16 = vpack.c.bf16 %v353_v2, %v354_v3  ;;  %v408_v2 = vrot.slane %v2615_v5, 1  ;;  %v409_v3 = vrot.slane %v2619_v11, 1  ;;  %vm2763_vm15 = vmpackc.low %vm3239_vm2, %vm1990_vm13  ;;  %v343_v5 = vsel %vm3235_vm0, %v340_v62, %v341_v37  ;;  %v2405_v23 = vld [vmem:[#allocation7 + $0xa0] sm:$0xff]  }
  0x47   :  { %2197 = vmatpush3.bf16.msra.mxu1 %v2387_v33  ;;  %v80_v33 = vadd.s32 80, %v2631_v20 }
  0x48   :  { %2198 = vmatprep.subr.bf16.mxu1 %v2388_v38 }
  0x49   :  { %2105 = vmatpush3.bf16.msra.mxu0 %v2365_v7  ;;  %v78_v7 = vadd.s32 64, %v2631_v20  ;;  %v160_v51 = vand.u32 15, %v80_v33  ;;  %v3263_v33 = vmov 0 }
  0x4a   :  { %2106 = vmatprep.subr.bf16.mxu0 %v2366_v8 }
  0x4b   :  { %2199 = vmatpush3.bf16.msra.mxu1 %v2388_v38  ;;  %v146_v26 = vand.u32 15, %v78_v7  ;;  %v336_v38 = vrot.slane %v2653_v39, 7  ;;  %vm1989_vm12 = vcmp.ne.s32.totalorder %v160_v51, 0 }
  0x4c   :  { %2200 = vmatprep.subr.bf16.mxu1 %v2389_v44  ;;  %vm2755_vm14 = vmpackc.low %vm3239_vm2, %vm1989_vm12 }
  0x4d   :  { %2107 = vmatpush3.bf16.msra.mxu0 %v2366_v8  ;;  %v1826_v8 = vpack.c.bf16 %v355_v63, %v356_v0  ;;  %vm1988_vm9 = vcmp.ne.s32.totalorder %v146_v26, 0  ;;  %v411_v26 = vrot.slane %v2623_v14, 1 }
  0x4e   :  { %2108 = vmatprep.subr.bf16.mxu0 %v2367_v9  ;;  %vm2735_vm11 = vmpackc.low %vm3239_vm2, %vm1988_vm9 }
  0x4f   :  { %2201 = vmatpush3.bf16.msra.mxu1 %v2389_v44  ;;  %v2407_v44 = vld [vmem:[#allocation7 + $0xb0] sm:$0xff]  }
  0x51   :  { %2109 = vmatpush3.bf16.msra.mxu0 %v2367_v9  ;;  %v332_v9 = vrot.slane %v2633_v21, 7 }
  0x52   :  { %2110 = vmatprep.subr.bf16.mxu0 %v2368_v10 }
  0x53   :  { %v352_v29 = vsel %vm3235_vm0, %v331_v58, %v332_v9  ;;  %v84_v58 = vadd.s32 112, %v2631_v20 }
  0x55   :  { %2111 = vmatpush3.bf16.msra.mxu0 %v2368_v10  ;;  %v333_v10 = vrot.slane %v2635_v22, 7 }
  0x56   :  { %2128 = vmatprep.subr.bf16.mxu0 %v2369_v13 }
  0x57   :  { %v351_v28 = vsel %vm3235_vm0, %v332_v9, %v333_v10 }
  0x58   :  { %2113 = vmatmul.mubr.bf16.vlgmr.msra.gmra.mrb[0].mxu0 %v513_v17  ;;  %v334_v17 = vrot.slane %v2637_v25, 7 }
  0x59   :  { %2129 = vmatpush3.bf16.msra.mxu0 %v2369_v13  ;;  %2116 = vmatprep.mubr.bf16.mxu0 %v514_v18  ;;  %v335_v18 = vrot.slane %v2639_v27, 7 }
  0x5a   :  { %2130 = vmatprep.subr.bf16.mxu0 %v2370_v19  ;;  %v350_v32 = vsel %vm3235_vm0, %v333_v10, %v334_v17  ;;  %v2383_v10 = vld [vmem:[#allocation5 + $0xb0] sm:$0xff]  }
  0x5b   :  { %v348_v54 = vsel %vm3235_vm0, %v335_v18, %v336_v38 }
  0x5d   :  { %2131 = vmatpush3.bf16.msra.mxu0 %v2370_v19  ;;  %v2378_v19 = vld [vmem:[#allocation5 + $0x88] sm:$0xff]  }
  0x5e   :  { %2132 = vmatprep.subr.bf16.mxu0 %v2371_v24 }
  0x60   :  { %2117 = vmatmul.mubr.bf16.gmra.mrb[4].mxu0 %v515_v30  ;;  %v2379_v30 = vld [vmem:[#allocation5 + $0x90] sm:$0xff]  }
  0x61   :  { %2133 = vmatpush3.bf16.msra.mxu0 %v2371_v24  ;;  %2120 = vmatprep.mubr.bf16.mxu0 %v516_v35  ;;  %v132_v24 = vand.u32 15, %v76_v6  ;;  %v1834_v35 = vpack.c.bf16 %v351_v28, %v352_v29  ;;  %v2382_v6 = vld [vmem:[#allocation5 + $0xa8] sm:$0xff]  }
  0x62   :  { %2134 = vmatprep.subr.bf16.mxu0 %v2372_v31 }
  0x63   :  { %vm1987_vm8 = vcmp.ne.s32.totalorder %v132_v24, 0  ;;  %v410_v24 = vrot.slane %v2621_v12, 1 }
  0x64   :  { %vm2728_vm10 = vmpackc.low %vm3239_vm2, %vm1987_vm8 }
  0x65   :  { %2135 = vmatpush3.bf16.msra.mxu0 %v2372_v31  ;;  %v349_v31 = vsel %vm3235_vm0, %v334_v17, %v335_v18  ;;  %v73_v18 = vadd.s32 24, %v2631_v20  ;;  %v436_v34 = vsel %vm3236_vm1, %v409_v3, %v410_v24 }
  0x66   :  { %2136 = vmatprep.subr.bf16.mxu0 %v2373_v41 }
  0x67   :  { %v111_v12 = vand.u32 15, %v73_v18 }
  0x68   :  { %2121 = vmatmul.mubr.bf16.gmra.mrb[8].mxu0 %v517_v45  ;;  %v1838_v45 = vpack.c.bf16 %v349_v31, %v350_v32  ;;  %v413_v31 = vrot.slane %v2633_v21, 1  ;;  %v2384_v32 = vld [vmem:[#allocation5 + $0xb8] sm:$0xff]  }
  0x69   :  { %2137 = vmatpush3.bf16.msra.mxu0 %v2373_v41  ;;  %2124 = vmatprep.mubr.bf16.mxu0 %v518_v47  ;;  %v337_v41 = vrot.slane %v2655_v40, 7  ;;  %v339_v47 = vrot.slane %v2659_v43, 7  ;;  %vm1993_vm12 = vcmp.ne.s32.totalorder %v111_v12, 15 }
  0x6a   :  { %2138 = vmatprep.subr.bf16.mxu0 %v2374_v46 }
  0x6b   :  { %v344_v11 = vsel %vm3235_vm0, %v339_v47, %v340_v62  ;;  %v419_v62 = vrot.slane %v2657_v42, 1 }
  0x6c   :  { %v1850_v37 = vpack.c.bf16 %v343_v5, %v344_v11  ;;  %v85_v11 = vadd.s32 120, %v2631_v20 }
  0x6d   :  { %2139 = vmatpush3.bf16.msra.mxu0 %v2374_v46  ;;  %v338_v46 = vrot.slane %v2657_v42, 7 }
  0x6e   :  { %2140 = vmatprep.subr.bf16.mxu0 %v2375_v49 }
  0x6f   :  { %v346_v57 = vsel %vm3235_vm0, %v337_v41, %v338_v46 }
  0x70   :  { %2125 = vmatmul.mubr.bf16.gmra.mrb[12].mxu0 %v519_v53  ;;  %v347_v53 = vsel %vm3235_vm0, %v336_v38, %v337_v41  ;;  %v77_v38 = vadd.s32 56, %v2631_v20  ;;  %v79_v41 = vadd.s32 72, %v2631_v20 }
  0x71   :  { %2141 = vmatpush3.bf16.msra.mxu0 %v2375_v49  ;;  %2144 = vmatprep.mubr.msk.bf16.mxu0 %vm2681_vm3, %v1822_v56  ;;  %v2380_v49 = vld [vmem:[#allocation5 + $0x98] sm:$0xff]   ;;  %v345_v56 = vsel %vm3235_vm0, %v338_v46, %v339_v47  ;;  %v1842_v61 = vpack.c.bf16 %v347_v53, %v348_v54  ;;  %v414_v46 = vrot.slane %v2635_v22, 1  ;;  %v415_v47 = vrot.slane %v2637_v25, 1 }
  0x72   :  { %2142 = vmatprep.subr.bf16.mxu0 %v2376_v59  ;;  %v1846_v0 = vpack.c.bf16 %v345_v56, %v346_v57  ;;  %v417_v53 = vrot.slane %v2653_v39, 1  ;;  %v3267_v54 = vmov 0  ;;  %v153_v22 = vand.u32 15, %v79_v41 }
  0x73   :  { %v431_v25 = vsel %vm3236_vm1, %v414_v46, %v415_v47  ;;  %v432_v27 = vsel %vm3236_vm1, %v413_v31, %v414_v46  ;;  %v430_v56 = vsel %vm3236_vm1, %v415_v47, %v416_v52  ;;  %v81_v57 = vadd.s32 88, %v2631_v20 }
  0x74   :  { %v429_v39 = vsel %vm3236_vm1, %v416_v52, %v417_v53 }
  0x75   :  { %2143 = vmatpush3.bf16.msra.mxu0 %v2376_v59  ;;  %v71_v59 = vadd.s32 8, %v2631_v20 }
  0x76   :  { %2160 = vmatprep.subr.bf16.mxu0 %v2377_v1 }
  0x77   :  { %v97_v9 = vand.u32 15, %v71_v59  ;;  %v1874_v59 = vpack.c.bf16 %v431_v25, %v432_v27 }
  0x78   :  { %2145 = vmatmul.mubr.msk.bf16.vlgmr.msra.gmra.mrb[0].mxu0 %vm2700_vm6, %v1826_v8  ;;  %v188_v8 = vand.u32 15, %v84_v58  ;;  %v83_v58 = vadd.s32 104, %v2631_v20 }
  0x79   :  { %2161 = vmatpush3.bf16.msra.mxu0 %v2377_v1  ;;  %2148 = vmatprep.mubr.msk.bf16.mxu0 %vm2707_vm7, %v1830_v16  ;;  %v407_v1 = vrot.slane %v2613_v4, 1  ;;  %v437_v16 = vsel %vm3236_vm1, %v408_v2, %v409_v3  ;;  %vm1992_vm5 = vcmp.ne.s32.totalorder %v97_v9, 15  ;;  %v420_v3 = vrot.slane %v2659_v43, 1  ;;  %v2392_v4 = vld [vmem:[#allocation7 + $0x78] sm:$0xff]  }
  0x7a   :  { %2162 = vmatprep.subr.bf16.mxu0 %v2378_v19  ;;  %vm1991_vm4 = vcmp.ne.s32.totalorder %v188_v8, 0  ;;  %vm2796_vm9 = vmpackc.low %vm1992_vm5, %vm3239_vm2  ;;  %v3271_v8 = vmov 0  ;;  %v167_v9 = vand.u32 15, %v81_v57  ;;  %v181_v5 = vand.u32 15, %v83_v58 }
  0x7b   :  { %v438_v17 = vsel %vm3236_vm1, %v407_v1, %v408_v2  ;;  %vm2789_vm8 = vmpackc.low %vm3239_vm2, %vm1991_vm4  ;;  %v3264_v33 = vsel %vm2796_vm9, 4294967295, %v3263_v33  ;;  %v1878_v2 = vpack.c.bf16 %v429_v39, %v430_v56 }
  0x7c   :  { %v1862_v29 = vpack.c.bf16 %v437_v16, %v438_v17  ;;  %vm2817_vm4 = vmpackc.low %vm1993_vm12, %vm3239_vm2  ;;  %v422_v16 = vrot.slane %v2649_v36, 1 }
  0x7d   :  { %2163 = vmatpush3.bf16.msra.mxu0 %v2378_v19  ;;  %v75_v19 = vadd.s32 40, %v2631_v20 }
  0x7e   :  { %2164 = vmatprep.subr.bf16.mxu0 %v2379_v30 }
  0x7f   :  { %v125_v14 = vand.u32 15, %v75_v19 }
  0x80   :  { %2149 = vmatmul.mubr.msk.bf16.gmra.mrb[4].mxu0 %vm2728_vm10, %v1834_v35 }
  0x81   :  { %2165 = vmatpush3.bf16.msra.mxu0 %v2379_v30  ;;  %2152 = vmatprep.mubr.msk.bf16.mxu0 %vm2735_vm11, %v1838_v45  ;;  %v412_v30 = vrot.slane %v2625_v15, 1  ;;  %v435_v15 = vsel %vm3236_vm1, %v410_v24, %v411_v26  ;;  %vm1994_vm13 = vcmp.ne.s32.totalorder %v125_v14, 15  ;;  %v2905_v14 = vld [vmem:[%s3230_s3] ss:$0 sm:$0xff] }
  0x82   :  { %2166 = vmatprep.subr.bf16.mxu0 %v2380_v49  ;;  %v1866_v45 = vpack.c.bf16 %v435_v15, %v436_v34  ;;  %vm2824_vm5 = vmpackc.low %vm1994_vm13, %vm3239_vm2  ;;  %vm1996_vm13 = vcmp.ne.s32.totalorder %v153_v22, 15 }
  0x83   :  { %v433_v21 = vsel %vm3236_vm1, %v412_v30, %v413_v31  ;;  %v434_v35 = vsel %vm3236_vm1, %v411_v26, %v412_v30  ;;  %v3268_v54 = vsel %vm2824_vm5, 4294967295, %v3267_v54  ;;  %vm2852_vm1 = vmpackc.low %vm1996_vm13, %vm3239_vm2  ;;  %v2390_v30 = vld [vmem:[#allocation7 + $0x68] sm:$0xff]   ;;  %v2391_v31 = vld [vmem:[#allocation7 + $0x70] sm:$0xff]  }
  0x84   :  { %v1870_v51 = vpack.c.bf16 %v433_v21, %v434_v35  ;;  %v3272_v8 = vsel %vm2852_vm1, 4294967295, %v3271_v8  ;;  %2202 = vmatprep.subr.bf16.mxu1 %v2390_v30 }
  0x85   :  { %2167 = vmatpush3.bf16.msra.mxu0 %v2380_v49  ;;  %v3265_v49 = vmov 0  ;;  %2203 = vmatpush3.bf16.msra.mxu1 %v2390_v30 }
  0x86   :  { %2168 = vmatprep.subr.bf16.mxu0 %v2381_v55  ;;  %v3266_v49 = vsel %vm2817_vm4, 4294967295, %v3265_v49  ;;  %2204 = vmatprep.subr.bf16.mxu1 %v2391_v31 }
  0x88   :  { %2153 = vmatmul.mubr.msk.bf16.gmra.mrb[8].mxu0 %vm2755_vm14, %v1842_v61  ;;  %v418_v61 = vrot.slane %v2655_v40, 1 }
  0x89   :  { %2169 = vmatpush3.bf16.msra.mxu0 %v2381_v55  ;;  %2156 = vmatprep.mubr.msk.bf16.mxu0 %vm2763_vm15, %v1846_v0  ;;  %v139_v55 = vand.u32 15, %v77_v38  ;;  %v3269_v0 = vmov 0 }
  0x8a   :  { %2170 = vmatprep.subr.bf16.mxu0 %v2382_v6  ;;  %2205 = vmatpush3.bf16.msra.mxu1 %v2391_v31 }
  0x8b   :  { %vm1995_vm12 = vcmp.ne.s32.totalorder %v139_v55, 15  ;;  %2206 = vmatprep.subr.bf16.mxu1 %v2392_v4 }
  0x8c   :  { %vm2845_vm0 = vmpackc.low %vm1995_vm12, %vm3239_vm2  ;;  %vm3273_vm12 = vcmp.lt.s32.totalorder %v2631_v20, 7 }
  0x8d   :  { %2171 = vmatpush3.bf16.msra.mxu0 %v2382_v6  ;;  %v3270_v0 = vsel %vm2845_vm0, 4294967295, %v3269_v0  ;;  %v421_v6 = vrot.slane %v2665_v48, 1  ;;  %v427_v40 = vsel %vm3273_vm12, %v418_v61, %v419_v62 }
  0x8e   :  { %2172 = vmatprep.subr.bf16.mxu0 %v2383_v10  ;;  %2207 = vmatpush3.bf16.msra.mxu1 %v2392_v4 }
  0x90   :  { %2157 = vmatmul.mubr.msk.bf16.gmra.mrb[12].mxu0 %vm2789_vm8, %v1850_v37  ;;  %v195_v37 = vand.u32 15, %v85_v11 }
  0x91   :  { %2173 = vmatpush3.bf16.msra.mxu0 %v2383_v10  ;;  %2176 = vmatprep.mubr.msk.bf16.mxu0 %vm2796_vm9, %v1862_v29  ;;  %vm1998_vm9 = vcmp.ne.s32.totalorder %v181_v5, 15  ;;  %v3283_v29 = vmov 0 }
  0x92   :  { %2174 = vmatprep.subr.bf16.mxu0 %v2384_v32 }
  0x95   :  { %2175 = vmatpush3.bf16.msra.mxu0 %v2384_v32  ;;  %v2900_v32 = vld [vmem:[%s3229_s2] ss:$0 sm:$0xff] }
  0x98   :  { %2177 = vmatmul.mubr.msk.bf16.vlgmr.msra.gmra.mrb[0].mxu0 %vm2817_vm4, %v1866_v45  ;;  %vm1997_vm4 = vcmp.ne.s32.totalorder %v167_v9, 15 }
  0x99   :  { %2180 = vmatprep.mubr.msk.bf16.mxu0 %vm2824_vm5, %v1870_v51  ;;  %vm3274_vm5 = vmmov %vm3273_vm12  ;;  %vm1999_vm12 = vcmp.ne.s32.totalorder %v195_v37, 15 }
  0x9a   :  { %v428_v42 = vsel %vm3274_vm5, %v417_v53, %v418_v61  ;;  %vm3275_vm13 = vmmov %vm3274_vm5 }
  0x9b   :  { %v425_v43 = vsel %vm3275_vm13, %v420_v3, %v421_v6  ;;  %vm3276_vm2 = vmmov %vm3274_vm5  ;;  %v1882_v10 = vpack.c.bf16 %v427_v40, %v428_v42 }
  0x9c   :  { %v426_v48 = vsel %vm3276_vm2, %v419_v62, %v420_v3  ;;  %v424_v36 = vsel %vm3276_vm2, %v421_v6, %v422_v16  ;;  %vm3287_vm13 = vmmov %vm3276_vm2 }
  0x9d   :  { %v1886_v18 = vpack.c.bf16 %v425_v43, %v426_v48 }
  0xa0   :  { %2181 = vmatmul.mubr.msk.bf16.gmra.mrb[4].mxu0 %vm2845_vm0, %v1874_v59 }
  0xa1   :  { %2184 = vmatprep.mubr.msk.bf16.mxu0 %vm2852_vm1, %v1878_v2  ;;  %vm3277_vm1 = vmmov 1  }
  0xa2   :  { %vm2871_vm0 = vmpackc.low %vm1997_vm4, %vm3277_vm1 }
  0xa3   :  { %vm2876_vm5 = vmpackc.low %vm1998_vm9, %vm3277_vm1 }
  0xa4   :  { %vm3282_vm4 = vmmov %vm3276_vm2 }
  0xa5   :  { %v439_v24 = vsel %vm3282_vm4, %v422_v16, %v407_v1  ;;  %vm2891_vm9 = vmpackc.low %vm1999_vm12, %vm3277_vm1  ;;  %v2393_v1 = vld [vmem:[#allocation7] sm:$0xff]   ;;  %vm3286_vm1 = vcmp.lt.s32.totalorder %v2631_v20, 1  ;;  %v2403_v20 = vld [vmem:[#allocation7 + $0x90] sm:$0xff]  }
  0xa6   :  { %v1890_v26 = vpack.c.bf16 %v439_v24, %v424_v36  ;;  %v3284_v29 = vsel %vm2891_vm9, 4294967295, %v3283_v29  ;;  %2224 = vmatprep.subr.bf16.mxu1 %v2393_v1  ;;  %vm3288_vm2 = vmmov %vm3286_vm1 }
  0xa7   :  { %3285 = vst [vmem:[#allocation12_spill] sm:$0xff] %v3284_v29  ;;  %vm3289_vm4 = vmmov %vm3286_vm1 }
  0xa8   :  { %2185 = vmatmul.mubr.msk.bf16.gmra.mrb[8].mxu0 %vm2871_vm0, %v1882_v10  ;;  %vm3290_vm12 = vmmov %vm3287_vm13 }
  0xa9   :  { %2188 = vmatprep.mubr.msk.bf16.mxu0 %vm2876_vm5, %v1886_v18  ;;  %v2394_v18 = vld [vmem:[#allocation7 + $0x8] sm:$0xff]  }
  0xb0   :  { %2189 = vmatmul.mubr.msk.bf16.gmra.mrb[12].mxu0 %vm2891_vm9, %v1890_v26 }
 0x16b   :  { %v2178_v12 = vpop.f32.mrb[0].mxu0 }
 0x16c   :  { %v1020_v34 = vmul.f32 %v2178_v12, %v2900_v32  ;;  %v932_v15 = vpop.f32.mrb[1].mxu0 }
 0x16d   :  { %v1018_v21 = vmul.f32 %v2900_v32, %v932_v15  ;;  %v2179_v35 = vpop.f32.mrb[2].mxu0 }
 0x16e   :  { %v1043_v38 = vadd.f32 %v2905_v14, %v1020_v34  ;;  %v1021_v41 = vmul.f32 %v2179_v35, %v2900_v32  ;;  %v935_v45 = vpop.f32.mrb[3].mxu0 }
 0x16f   :  { %v1041_v46 = vadd.f32 %v2905_v14, %v1018_v21  ;;  %v1019_v47 = vmul.f32 %v2900_v32, %v935_v45 }
 0x170   :  { %v1059_v51 = vmax.f32 %v1043_v38, 0.0  ;;  %v1044_v52 = vadd.f32 %v2905_v14, %v1021_v41  ;;  %v2395_v38 = vld [vmem:[#allocation7 + $0x10] sm:$0xff]  }
 0x171   :  { %v2914_v53 = vmax.f32 %v1041_v46, 0.0  ;;  %v1042_v55 = vadd.f32 %v2905_v14, %v1019_v47 }
 0x172   :  { %v1075_v22 = vrot.slane %v1059_v51, 7  ;;  %v2917_v25 = vmax.f32 %v1044_v52, 0.0  ;;  %v1123_v27 = vrot.slane %v1059_v51, 1 }
 0x173   :  { %v1073_v39 = vrot.slane %v2914_v53, 7  ;;  %v3244_v56 = vrot.slane %v2914_v53, 1  ;;  %v1058_v57 = vmax.f32 %v1042_v55, 0.0  ;;  %v2182_v58 = vpop.f32.mrb[4].mxu0 }
 0x174   :  { %v1076_v59 = vrot.slane %v2917_v25, 7  ;;  %v1124_v61 = vrot.slane %v2917_v25, 1  ;;  %v1024_v62 = vmul.f32 %v2182_v58, %v2900_v32  ;;  %v948_v2 = vpop.f32.mrb[5].mxu0  ;;  %v1194_v3 = vpack.c.bf16 %v2917_v25, %v1059_v51 }
 0x175   :  { %v1074_v6 = vrot.slane %v1058_v57, 7  ;;  %v1122_v9 = vrot.slane %v1058_v57, 1  ;;  %v1022_v5 = vmul.f32 %v2900_v32, %v948_v2  ;;  %v2183_v40 = vpop.f32.mrb[6].mxu0  ;;  %v1193_v42 = vpack.c.bf16 %v1058_v57, %v2914_v53 }
 0x176   :  { %v2929_v43 = vsel %vm3286_vm1, %v1075_v22, %v1076_v59  ;;  %v2933_v48 = vsel %vm3287_vm13, %v1123_v27, %v1124_v61  ;;  %v1047_v11 = vadd.f32 %v2905_v14, %v1024_v62  ;;  %v1025_v10 = vmul.f32 %v2183_v40, %v2900_v32  ;;  %v951_v16 = vpop.f32.mrb[7].mxu0  ;;  %vm3291_vm1 = vmmov %vm3290_vm12 }
 0x177   :  { %v2939_v37 = vsel %vm3288_vm2, %v1074_v6, %v1075_v22  ;;  %v1045_v36 = vadd.f32 %v2905_v14, %v1022_v5  ;;  %v1023_v24 = vmul.f32 %v2900_v32, %v951_v16  ;;  %2208 = vmatprep.mubr.bf16.mxu1 %v1193_v42  ;;  %v2947_v26 = vsel %vm3289_vm4, %v1073_v39, %v1074_v6  ;;  %vm3292_vm13 = vmmov %vm3291_vm1 }
 0x178   :  { %v2951_v31 = vmax.f32 %v1047_v11, 0.0  ;;  %v1048_v4 = vadd.f32 %v2905_v14, %v1025_v10  ;;  %2209 = vmatmul.mubr.bf16.vlgmr.msra.gmra.mrb[0].mxu1 %v1194_v3  ;;  %v2956_v12 = vsel %vm3290_vm12, %v1122_v9, %v1123_v27  ;;  %v2963_v21 = vsel %vm3291_vm1, %v3244_v56, %v1122_v9  ;;  %v2396_v10 = vld [vmem:[#allocation7 + $0x18] sm:$0xff]   ;;  %vm3293_vm4 = vmmov %vm3288_vm2 }
 0x179   :  { %v1061_v34 = vmax.f32 %v1045_v36, 0.0  ;;  %v1046_v15 = vadd.f32 %v2905_v14, %v1023_v24  ;;  %2225 = vmatpush3.bf16.msra.mxu1 %v2393_v1  ;;  %vm3294_vm12 = vmmov %vm3288_vm2 }
 0x17a   :  { %v2965_v35 = vmax.f32 %v1048_v4, 0.0  ;;  %2226 = vmatprep.subr.bf16.mxu1 %v2394_v18  ;;  %v1079_v45 = vrot.slane %v2951_v31, 7  ;;  %v1127_v1 = vrot.slane %v2951_v31, 1  ;;  %vm3295_vm1 = vmmov %vm3288_vm2 }
 0x17b   :  { %v1077_v46 = vrot.slane %v1061_v34, 7  ;;  %v1125_v47 = vrot.slane %v1061_v34, 1  ;;  %v1062_v51 = vmax.f32 %v1046_v15, 0.0  ;;  %v2186_v52 = vpop.f32.mrb[8].mxu0 }
 0x17c   :  { %v1080_v55 = vrot.slane %v2965_v35, 7  ;;  %v1028_v22 = vmul.f32 %v2186_v52, %v2900_v32  ;;  %v964_v25 = vpop.f32.mrb[9].mxu0  ;;  %v1196_v27 = vpack.c.bf16 %v2965_v35, %v2951_v31  ;;  %v1128_v52 = vrot.slane %v2965_v35, 1 }
 0x17d   :  { %v2977_v57 = vsel %vm3292_vm13, %v1124_v61, %v1125_v47  ;;  %v1078_v58 = vrot.slane %v1062_v51, 7  ;;  %v1126_v62 = vrot.slane %v1062_v51, 1  ;;  %v1026_v2 = vmul.f32 %v2900_v32, %v964_v25  ;;  %v2187_v3 = vpop.f32.mrb[10].mxu0  ;;  %2227 = vmatpush3.bf16.msra.mxu1 %v2394_v18 }
 0x17e   :  { %v1051_v9 = vadd.f32 %v2905_v14, %v1028_v22  ;;  %v1029_v5 = vmul.f32 %v2187_v3, %v2900_v32  ;;  %v967_v40 = vpop.f32.mrb[11].mxu0  ;;  %v1195_v42 = vpack.c.bf16 %v1062_v51, %v1061_v34  ;;  %2228 = vmatprep.subr.bf16.mxu1 %v2395_v38  ;;  %v2992_v18 = vsel %vm3293_vm4, %v1076_v59, %v1077_v46  ;;  %v2397_v3 = vld [vmem:[#allocation7 + $0x20] sm:$0xff]   ;;  %vm3297_vm4 = vmmov %vm3295_vm1 }
 0x17f   :  { %v1049_v11 = vadd.f32 %v2905_v14, %v1026_v2  ;;  %v1027_v61 = vmul.f32 %v2900_v32, %v967_v40  ;;  %v2988_v16 = vsel %vm3288_vm2, %v1077_v46, %v1078_v58  ;;  %v3001_v34 = vsel %vm3294_vm12, %v1079_v45, %v1080_v55  ;;  %vm3296_vm2 = vmmov %vm3292_vm13 }
 0x180   :  { %v2994_v36 = vmax.f32 %v1051_v9, 0.0  ;;  %v1052_v24 = vadd.f32 %v2905_v14, %v1029_v5  ;;  %2212 = vmatprep.mubr.bf16.mxu1 %v1195_v42  ;;  %v3008_v59 = vsel %vm3295_vm1, %v1078_v58, %v1079_v45  ;;  %v3014_v46 = vsel %vm3292_vm13, %v1126_v62, %v1127_v1  ;;  %vm3298_vm12 = vmmov %vm3295_vm1 }
 0x181   :  { %v3003_v15 = vmax.f32 %v1049_v11, 0.0  ;;  %v1050_v51 = vadd.f32 %v2905_v14, %v1027_v61  ;;  %2213 = vmatmul.mubr.bf16.gmra.mrb[4].mxu1 %v1196_v27  ;;  %v3025_v9 = vsel %vm3296_vm2, %v1125_v47, %v1126_v62  ;;  %vm3299_vm13 = vmmov %vm3295_vm1  ;;  %v3313_v60 = vpack.c.bf16 %v2988_v16, %v2992_v18  ;;  %v2409_v18 = vld [vmem:[#allocation2 + $0x10] sm:$0xff] }
 0x182   :  { %v3017_v22 = vmax.f32 %v1052_v24, 0.0  ;;  %2229 = vmatpush3.bf16.msra.mxu1 %v2395_v38  ;;  %v1083_v27 = vrot.slane %v2994_v36, 7  ;;  %v3246_v35 = vrot.slane %v2994_v36, 1  ;;  %v3317_v16 = vpack.c.bf16 %v2956_v12, %v2963_v21 }
 0x183   :  { %v1081_v2 = vrot.slane %v3003_v15, 7  ;;  %v1066_v45 = vmax.f32 %v1050_v51, 0.0  ;;  %v2190_v58 = vpop.f32.mrb[12].mxu0  ;;  %2230 = vmatprep.subr.bf16.mxu1 %v2396_v10  ;;  %v1129_v11 = vrot.slane %v3003_v15, 1  ;;  %v3319_v63 = vpack.c.bf16 %v2977_v57, %v2933_v48 }
 0x184   :  { %v1084_v5 = vrot.slane %v3017_v22, 7  ;;  %v1032_v38 = vmul.f32 %v2190_v58, %v2900_v32  ;;  %v980_v40 = vpop.f32.mrb[13].mxu0  ;;  %v1198_v42 = vpack.c.bf16 %v3017_v22, %v2994_v36  ;;  %v1132_v4 = vrot.slane %v3017_v22, 1 }
 0x185   :  { %v1082_v61 = vrot.slane %v1066_v45, 7  ;;  %v1030_v24 = vmul.f32 %v2900_v32, %v980_v40  ;;  %v2191_v51 = vpop.f32.mrb[14].mxu0  ;;  %v1197_v6 = vpack.c.bf16 %v1066_v45, %v3003_v15  ;;  %v3039_v58 = vsel %vm3297_vm4, %v1080_v55, %v1081_v2  ;;  %vm3300_vm4 = vmmov %vm3296_vm2 }
 0x186   :  { %v1055_v47 = vadd.f32 %v2905_v14, %v1032_v38  ;;  %v1033_v62 = vmul.f32 %v2191_v51, %v2900_v32  ;;  %2231 = vmatpush3.bf16.msra.mxu1 %v2396_v10  ;;  %v983_v41 = vpop.f32.mrb[15].mxu0  ;;  %v3043_v25 = vsel %vm3298_vm12, %v1083_v27, %v1084_v5  ;;  %v2398_v38 = vld [vmem:[#allocation7 + $0x28] sm:$0xff]   ;;  %v3066_v30 = vsel %vm3296_vm2, %v1128_v52, %v1129_v11  ;;  %vm3301_vm12 = vmmov %vm3295_vm1 }
 0x187   :  { %v1053_v40 = vadd.f32 %v2905_v14, %v1030_v24  ;;  %v1031_v15 = vmul.f32 %v2900_v32, %v983_v41  ;;  %2216 = vmatprep.mubr.bf16.mxu1 %v1197_v6  ;;  %2232 = vmatprep.subr.bf16.mxu1 %v2397_v3  ;;  %v3050_v10 = vsel %vm3295_vm1, %v1081_v2, %v1082_v61  ;;  %v1130_v2 = vrot.slane %v1066_v45, 1 }
 0x188   :  { %v1071_v51 = vmax.f32 %v1055_v47, 0.0  ;;  %v1056_v55 = vadd.f32 %v2905_v14, %v1033_v62  ;;  %v3057_v22 = vsel %vm3299_vm13, %v1082_v61, %v1083_v27  ;;  %vm3302_vm13 = vmmov %vm3295_vm1  ;;  %v3315_v13 = vpack.c.bf16 %v3050_v10, %v3039_v58  ;;  %v2411_v10 = vld [vmem:[#allocation2 + $0x18] sm:$0xff] }
 0x189   :  { %v1069_v24 = vmax.f32 %v1053_v40, 0.0  ;;  %v1054_v32 = vadd.f32 %v2905_v14, %v1031_v15  ;;  %2217 = vmatmul.mubr.bf16.gmra.mrb[8].mxu1 %v1198_v42  ;;  %v2399_v14 = vld [vmem:[#allocation7 + $0x30] sm:$0xff]   ;;  %v3072_v42 = vsel %vm3300_vm4, %v1127_v1, %v1128_v52  ;;  %v1142_v52 = vsel %vm3296_vm2, %v1130_v2, %v3246_v35  ;;  %vm3303_vm4 = vmmov %vm3296_vm2 }
 0x18a   :  { %v1087_v47 = vrot.slane %v1071_v51, 7  ;;  %v1072_v62 = vmax.f32 %v1056_v55, 0.0  ;;  %2233 = vmatpush3.bf16.msra.mxu1 %v2397_v3  ;;  %v3321_v7 = vpack.c.bf16 %v3014_v46, %v3025_v9  ;;  %v3323_v28 = vpack.c.bf16 %v3066_v30, %v3072_v42  ;;  %v2410_v46 = vld [vmem:[#allocation2] sm:$0xff]  ;;  %v2412_v42 = vld [vmem:[#allocation2 + $0x8] sm:$0xff] }
 0x18b   :  { %v1085_v27 = vrot.slane %v1069_v24, 7  ;;  %v1133_v61 = vrot.slane %v1069_v24, 1  ;;  %v1070_v40 = vmax.f32 %v1054_v32, 0.0  ;;  %2234 = vmatprep.subr.bf16.mxu1 %v2398_v38 }
 0x18c   :  { %v1088_v15 = vrot.slane %v1072_v62, 7  ;;  %v1136_v45 = vrot.slane %v1072_v62, 1  ;;  %v1200_v6 = vpack.c.bf16 %v1072_v62, %v1071_v51  ;;  %v1135_v62 = vrot.slane %v1071_v51, 1 }
 0x18d   :  { %v1086_v55 = vrot.slane %v1070_v40, 7  ;;  %v1134_v41 = vrot.slane %v1070_v40, 1  ;;  %v1199_v56 = vpack.c.bf16 %v1070_v40, %v1069_v24  ;;  %v1092_v32 = vsel %vm3301_vm12, %v1084_v5, %v1085_v27  ;;  %vm3304_vm12 = vmmov %vm3295_vm1 }
 0x18e   :  { %2235 = vmatpush3.bf16.msra.mxu1 %v2398_v38  ;;  %v1104_v31 = vsel %vm3295_vm1, %v1088_v15, %v1073_v39  ;;  %v1089_v1 = vsel %vm3302_vm13, %v1087_v47, %v1088_v15  ;;  %v1143_v24 = vsel %vm3303_vm4, %v1129_v11, %v1130_v2  ;;  %v2400_v38 = vld [vmem:[#allocation7 + $0x38] sm:$0xff]   ;;  %vm3305_vm13 = vmmov %vm3296_vm2  ;;  %v3306_v11 = vrot.slane %v2994_v36, 1 }
 0x18f   :  { %2220 = vmatprep.mubr.bf16.mxu1 %v1199_v56  ;;  %2236 = vmatprep.subr.bf16.mxu1 %v2399_v14  ;;  %v1912_v5 = vpack.c.bf16 %v2947_v26, %v1104_v31  ;;  %v1091_v39 = vsel %vm3304_vm12, %v1085_v27, %v1086_v55  ;;  %v1090_v40 = vsel %vm3295_vm1, %v1086_v55, %v1087_v47  ;;  %vm3307_vm4 = vmmov %vm3296_vm2  ;;  %v3310_v36 = vrot.slane %v2914_v53, 1  ;;  %v2401_v27 = vld [vmem:[#allocation7 + $0x80] sm:$0xff]   ;;  %v2404_v53 = vld [vmem:[#allocation7 + $0x98] sm:$0xff]  }
 0x190   :  { %v1936_v15 = vpack.c.bf16 %v1091_v39, %v1092_v32  ;;  %v1940_v3 = vpack.c.bf16 %v1089_v1, %v1090_v40  ;;  %v1968_v29 = vpack.c.bf16 %v1142_v52, %v1143_v24  ;;  %v1140_v35 = vsel %vm3305_vm13, %v1132_v4, %v1133_v61  ;;  %vm3308_vm12 = vmmov %vm3296_vm2 }
 0x191   :  { %2221 = vmatmul.mubr.bf16.gmra.mrb[12].mxu1 %v1200_v6  ;;  %v1141_v56 = vsel %vm3296_vm2, %v3306_v11, %v1132_v4  ;;  %v1138_v26 = vsel %vm3307_vm4, %v1134_v41, %v1135_v62  ;;  %v1139_v51 = vsel %vm3308_vm12, %v1133_v61, %v1134_v41  ;;  %vm3309_vm1 = vmmov %vm3296_vm2  ;;  %v2402_v41 = vld [vmem:[#allocation7 + $0x88] sm:$0xff]   ;;  %v3312_v61 = vpack.c.bf16 %v2929_v43, %v2939_v37  ;;  %v2413_v11 = vld [vmem:[#allocation2 + $0x30] sm:$0xff] }
 0x192   :  { %v1137_v2 = vsel %vm3309_vm1, %v1135_v62, %v1136_v45  ;;  %2237 = vmatpush3.bf16.msra.mxu1 %v2399_v14  ;;  %2240 = vmatprep.mubr.msk.bf16.mxu1 %vm2681_vm3, %v1912_v5  ;;  %v1972_v47 = vpack.c.bf16 %v1140_v35, %v1141_v56  ;;  %v1976_v6 = vpack.c.bf16 %v1138_v26, %v1139_v51  ;;  %vm3311_vm13 = vmmov %vm3309_vm1  ;;  %v2406_v43 = vld [vmem:[#allocation7 + $0xa8] sm:$0xff]   ;;  %v2414_v51 = vld [vmem:[#allocation2 + $0x20] sm:$0xff] }
 0x193   :  { %v1152_v4 = vsel %vm3311_vm13, %v1136_v45, %v3310_v36  ;;  %2238 = vmatprep.subr.bf16.mxu1 %v2400_v38  ;;  %v3314_v35 = vpack.c.bf16 %v3001_v34, %v3008_v59  ;;  %v3316_v37 = vpack.c.bf16 %v3043_v25, %v3057_v22  ;;  %vm3318_vm3 = vnez %v3264_v33  ;;  %v2415_v36 = vld [vmem:[#allocation2 + $0x38] sm:$0xff]  ;;  %v2418_v33 = vld [vmem:[#allocation2 + $0x40] sm:$0xff] }
 0x194   :  { %v1980_v55 = vpack.c.bf16 %v1152_v4, %v1137_v2 }
 0x196   :  { %2239 = vmatpush3.bf16.msra.mxu1 %v2400_v38 }
 0x197   :  { %2256 = vmatprep.subr.bf16.mxu1 %v2401_v27 }
 0x199   :  { %2241 = vmatmul.mubr.msk.bf16.vlgmr.msra.gmra.mrb[0].mxu1 %vm2700_vm6, %v3312_v61  ;;  %vm3320_vm6 = vnez %v3266_v49  ;;  %v3173_v49 = vld [vmem:[%s3232_s5] ss:$0 sm:$0xff]  ;;  %s2527_s5 = smov [#allocation8]  }
 0x19a   :  { %2244 = vmatprep.mubr.msk.bf16.mxu1 %vm2707_vm7, %v3313_v60  ;;  %2257 = vmatpush3.bf16.msra.mxu1 %v2401_v27  ;;  %vm3322_vm7 = vnez %v3268_v54 }
 0x19b   :  { %2258 = vmatprep.subr.bf16.mxu1 %v2402_v41 }
 0x19e   :  { %2259 = vmatpush3.bf16.msra.mxu1 %v2402_v41 }
 0x19f   :  { %2260 = vmatprep.subr.bf16.mxu1 %v2403_v20 }
 0x1a1   :  { %2245 = vmatmul.mubr.msk.bf16.gmra.mrb[4].mxu1 %vm2728_vm10, %v3314_v35  ;;  %vm3324_vm10 = vnez %v3270_v0  ;;  %v3178_v0 = vld [vmem:[%s3233_s6] ss:$0 sm:$0xff]  ;;  %s1791_s6 = sshll.u32 %s2527_s5, 4  ;;  %s1792_s6 = int_to_ptr.vmem [resolvable:$true] %s1791_s6 }
 0x1a2   :  { %2248 = vmatprep.mubr.msk.bf16.mxu1 %vm2735_vm11, %v3315_v13  ;;  %2261 = vmatpush3.bf16.msra.mxu1 %v2403_v20  ;;  %vm3325_vm11 = vnez %v3272_v8  ;;  %s2491_s21 = scalar_lea.vmem %s1792_s6, 2048  ;;  %p2496_p11 = scmp.lt.s32.totalorder %s1792_s6, %s1792_s6 }
 0x1a3   :  { %2262 = vmatprep.subr.bf16.mxu1 %v2404_v53  ;;  %p2492_p10 = scmp.ne.s32.totalorder %s1792_s6, %s2491_s21  ;;  %p2497_p12 = scmp.lt.s32.totalorder %s2491_s21, %s2491_s21 }
 0x1a5   :  { %p2498_p13 = por %p2497_p12, %p2496_p11 }
 0x1a6   :  { %2263 = vmatpush3.bf16.msra.mxu1 %v2404_v53 }
 0x1a7   :  { %2264 = vmatprep.subr.bf16.mxu1 %v2405_v23  ;;  %p2499_p0 = pnand %p2498_p13, %p2492_p10 }
 0x1a9   :  { %2249 = vmatmul.mubr.msk.bf16.gmra.mrb[8].mxu1 %vm2755_vm14, %v3316_v37 }
 0x1aa   :  { %2252 = vmatprep.mubr.msk.bf16.mxu1 %vm2763_vm15, %v1936_v15  ;;  %2265 = vmatpush3.bf16.msra.mxu1 %v2405_v23 }
 0x1ab   :  { %2266 = vmatprep.subr.bf16.mxu1 %v2406_v43 }
 0x1ae   :  { %2267 = vmatpush3.bf16.msra.mxu1 %v2406_v43 }
 0x1af   :  { %2268 = vmatprep.subr.bf16.mxu1 %v2407_v44 }
 0x1b1   :  { %2253 = vmatmul.mubr.msk.bf16.gmra.mrb[12].mxu1 %vm2789_vm8, %v1940_v3 }
 0x1b2   :  { %2269 = vmatpush3.bf16.msra.mxu1 %v2407_v44  ;;  %2272 = vmatprep.mubr.msk.bf16.mxu1 %vm3318_vm3, %v3317_v16 }
 0x1b3   :  { %2270 = vmatprep.subr.bf16.mxu1 %v2408_v50 }
 0x1b6   :  { %2271 = vmatpush3.bf16.msra.mxu1 %v2408_v50 }
 0x1b9   :  { %2273 = vmatmul.mubr.msk.bf16.vlgmr.msra.gmra.mrb[0].mxu1 %vm3320_vm6, %v3319_v63  ;;  %v2417_v63 = vld [vmem:[#allocation2 + $0x50] sm:$0xff] }
 0x1ba   :  { %2276 = vmatprep.mubr.msk.bf16.mxu1 %vm3322_vm7, %v3321_v7 }
 0x1c1   :  { %2277 = vmatmul.mubr.msk.bf16.gmra.mrb[4].mxu1 %vm3324_vm10, %v3323_v28 }
 0x1c2   :  { %2280 = vmatprep.mubr.msk.bf16.mxu1 %vm3325_vm11, %v1968_v29 }
 0x1c9   :  { %2281 = vmatmul.mubr.msk.bf16.gmra.mrb[8].mxu1 %vm2871_vm0, %v1972_v47 }
 0x1ca   :  { %2284 = vmatprep.mubr.msk.bf16.mxu1 %vm2876_vm5, %v1976_v6 }
 0x1d1   :  { %2285 = vmatmul.mubr.msk.bf16.gmra.mrb[12].mxu1 %vm2891_vm9, %v1980_v55  ;;  %v2416_v55 = vld [vmem:[#allocation2 + $0x28] sm:$0xff] }
 0x28c   :  { %v2274_v54 = vpop.f32.mrb[0].mxu1 }
 0x28d   :  { %v1701_v8 = vmul.f32 %v2274_v54, %v3173_v49  ;;  %v1613_v17 = vpop.f32.mrb[1].mxu1 }
 0x28e   :  { %v1699_v19 = vmul.f32 %v3173_v49, %v1613_v17  ;;  %v2275_v29 = vpop.f32.mrb[2].mxu1 }
 0x28f   :  { %v1724_v48 = vadd.f32 %v3178_v0, %v1701_v8  ;;  %v1702_v30 = vmul.f32 %v2275_v29, %v3173_v49  ;;  %v1616_v12 = vpop.f32.mrb[3].mxu1 }
 0x290   :  { %v1722_v21 = vadd.f32 %v3178_v0, %v1699_v19  ;;  %v1700_v57 = vmul.f32 %v3173_v49, %v1616_v12  ;;  %v2419_v19 = vld [vmem:[#allocation2 + $0x58] sm:$0xff] }
 0x291   :  { %v1740_v34 = vadd.f32 %v2409_v18, %v1724_v48  ;;  %v1725_v59 = vadd.f32 %v3178_v0, %v1702_v30  ;;  %v2420_v30 = vld [vmem:[#allocation2 + $0x48] sm:$0xff] }
 0x292   :  { %v1738_v25 = vadd.f32 %v2410_v46, %v1722_v21  ;;  %v1723_v9 = vadd.f32 %v3178_v0, %v1700_v57 }
 0x293   :  { %v1756_v58 = vmax.f32 %v1740_v34, 0.0  ;;  %v1741_v22 = vadd.f32 %v2411_v10, %v1725_v59 }
 0x294   :  { %v1754_v14 = vmax.f32 %v1738_v25, 0.0  ;;  %v1739_v45 = vadd.f32 %v2412_v42, %v1723_v9  ;;  %v2278_v3 = vpop.f32.mrb[4].mxu1  ;;  %v2421_v42 = vld [vmem:[#allocation2 + $0x70] sm:$0xff] }
 0x295   :  { %1772 = vst [vmem:[#allocation8 + $0x10] sm:$0xff] %v1756_v58  ;;  %v1757_v32 = vmax.f32 %v1741_v22, 0.0  ;;  %v1705_v31 = vmul.f32 %v2278_v3, %v3173_v49  ;;  %v1629_v1 = vpop.f32.mrb[5].mxu1 }
 0x296   :  { %1770 = vst [vmem:[#allocation8] sm:$0xff] %v1754_v14  ;;  %v1755_v52 = vmax.f32 %v1739_v45, 0.0  ;;  %v1703_v24 = vmul.f32 %v3173_v49, %v1629_v1  ;;  %v2279_v62 = vpop.f32.mrb[6].mxu1 }
 0x297   :  { %1773 = vst [vmem:[#allocation8 + $0x18] sm:$0xff] %v1757_v32  ;;  %v1728_v5 = vadd.f32 %v3178_v0, %v1705_v31  ;;  %v1706_v38 = vmul.f32 %v2279_v62, %v3173_v49  ;;  %v1632_v39 = vpop.f32.mrb[7].mxu1  ;;  %v2422_v32 = vld [vmem:[#allocation2 + $0x60] sm:$0xff] }
 0x298   :  { %1771 = vst [vmem:[#allocation8 + $0x8] sm:$0xff] %v1755_v52  ;;  %v1726_v40 = vadd.f32 %v3178_v0, %v1703_v24  ;;  %v1704_v15 = vmul.f32 %v3173_v49, %v1632_v39  ;;  %v2423_v24 = vld [vmem:[#allocation2 + $0x78] sm:$0xff] }
 0x299   :  { %v1744_v56 = vadd.f32 %v2413_v11, %v1728_v5  ;;  %v1729_v26 = vadd.f32 %v3178_v0, %v1706_v38  ;;  %v2424_v38 = vld [vmem:[#allocation2 + $0x68] sm:$0xff] }
 0x29a   :  { %v1742_v2 = vadd.f32 %v2414_v51, %v1726_v40  ;;  %v1727_v47 = vadd.f32 %v3178_v0, %v1704_v15 }
 0x29b   :  { %v1760_v6 = vmax.f32 %v1744_v56, 0.0  ;;  %v1745_v4 = vadd.f32 %v2415_v36, %v1729_v26 }
 0x29c   :  { %v1758_v27 = vmax.f32 %v1742_v2, 0.0  ;;  %v1743_v41 = vadd.f32 %v2416_v55, %v1727_v47  ;;  %v2282_v61 = vpop.f32.mrb[8].mxu1 }
 0x29d   :  { %1776 = vst [vmem:[#allocation8 + $0x30] sm:$0xff] %v1760_v6  ;;  %v1761_v60 = vmax.f32 %v1745_v4, 0.0  ;;  %v1709_v20 = vmul.f32 %v2282_v61, %v3173_v49  ;;  %v1645_v53 = vpop.f32.mrb[9].mxu1 }
 0x29e   :  { %1774 = vst [vmem:[#allocation8 + $0x20] sm:$0xff] %v1758_v27  ;;  %v1759_v35 = vmax.f32 %v1743_v41, 0.0  ;;  %v1707_v13 = vmul.f32 %v3173_v49, %v1645_v53  ;;  %v2283_v23 = vpop.f32.mrb[10].mxu1 }
 0x29f   :  { %1777 = vst [vmem:[#allocation8 + $0x38] sm:$0xff] %v1761_v60  ;;  %v1732_v43 = vadd.f32 %v3178_v0, %v1709_v20  ;;  %v1710_v37 = vmul.f32 %v2283_v23, %v3173_v49  ;;  %v1648_v44 = vpop.f32.mrb[11].mxu1 }
 0x2a0   :  { %1775 = vst [vmem:[#allocation8 + $0x28] sm:$0xff] %v1759_v35  ;;  %v1730_v50 = vadd.f32 %v3178_v0, %v1707_v13  ;;  %v1708_v16 = vmul.f32 %v3173_v49, %v1648_v44 }
 0x2a1   :  { %v1748_v7 = vadd.f32 %v2417_v63, %v1732_v43  ;;  %v1733_v28 = vadd.f32 %v3178_v0, %v1710_v37 }
 0x2a2   :  { %v1746_v54 = vadd.f32 %v2418_v33, %v1730_v50  ;;  %v1731_v8 = vadd.f32 %v3178_v0, %v1708_v16 }
 0x2a3   :  { %v1764_v17 = vmax.f32 %v1748_v7, 0.0  ;;  %v1749_v29 = vadd.f32 %v2419_v19, %v1733_v28 }
 0x2a4   :  { %v1762_v48 = vmax.f32 %v1746_v54, 0.0  ;;  %v1747_v12 = vadd.f32 %v2420_v30, %v1731_v8  ;;  %v2286_v21 = vpop.f32.mrb[12].mxu1 }
 0x2a5   :  { %1780 = vst [vmem:[#allocation8 + $0x50] sm:$0xff] %v1764_v17  ;;  %v1765_v57 = vmax.f32 %v1749_v29, 0.0  ;;  %v1713_v18 = vmul.f32 %v2286_v21, %v3173_v49  ;;  %v1661_v34 = vpop.f32.mrb[13].mxu1 }
 0x2a6   :  { %1778 = vst [vmem:[#allocation8 + $0x40] sm:$0xff] %v1762_v48  ;;  %v1763_v59 = vmax.f32 %v1747_v12, 0.0  ;;  %v1711_v46 = vmul.f32 %v3173_v49, %v1661_v34  ;;  %v2287_v25 = vpop.f32.mrb[14].mxu1 }
 0x2a7   :  { %1781 = vst [vmem:[#allocation8 + $0x58] sm:$0xff] %v1765_v57  ;;  %v1736_v9 = vadd.f32 %v3178_v0, %v1713_v18  ;;  %v1714_v58 = vmul.f32 %v2287_v25, %v3173_v49  ;;  %v1664_v10 = vpop.f32.mrb[15].mxu1 }
 0x2a8   :  { %1779 = vst [vmem:[#allocation8 + $0x48] sm:$0xff] %v1763_v59  ;;  %v1734_v22 = vadd.f32 %v3178_v0, %v1711_v46  ;;  %v1712_v14 = vmul.f32 %v3173_v49, %v1664_v10 }
 0x2a9   :  { %v1752_v45 = vadd.f32 %v2421_v42, %v1736_v9  ;;  %v1737_v3 = vadd.f32 %v3178_v0, %v1714_v58 }
 0x2aa   :  { %v1750_v31 = vadd.f32 %v2422_v32, %v1734_v22  ;;  %v1735_v1 = vadd.f32 %v3178_v0, %v1712_v14 }
 0x2ab   :  { %v1768_v52 = vmax.f32 %v1752_v45, 0.0  ;;  %v1753_v62 = vadd.f32 %v2423_v24, %v1737_v3 }
 0x2ac   :  { %v1766_v5 = vmax.f32 %v1750_v31, 0.0  ;;  %v1751_v39 = vadd.f32 %v2424_v38, %v1735_v1 }
 0x2ad   :  { %1784 = vst [vmem:[#allocation8 + $0x70] sm:$0xff] %v1768_v52  ;;  %v1769_v40 = vmax.f32 %v1753_v62, 0.0 }
 0x2ae   :  { %1782 = vst [vmem:[#allocation8 + $0x60] sm:$0xff] %v1766_v5  ;;  %v1767_v49 = vmax.f32 %v1751_v39, 0.0 }
 0x2af   :  { %1785 = vst [vmem:[#allocation8 + $0x78] sm:$0xff] %v1769_v40 }
 0x2b0   :  { %1783 = vst [vmem:[#allocation8 + $0x68] sm:$0xff] %v1767_v49 }
 0x2b1   :  { %2502 = shalt.err (!%p2499_p0)
}
 0x2b2   :  { %s2503_s24 = scalar_lea.hbm %s3234_s7, 2048 }
 0x2b3   :  { %p2504_p1 = scmp.ne.s32.totalorder %s3234_s7, %s2503_s24  ;;  %p2507_p2 = scmp.lt.u32.totalorder %s2503_s24, %s3234_s7 }
 0x2b5   :  { %p2509_p3 = pnand %p2507_p2, %p2504_p1 }
 0x2b7   :  { %2512 = shalt.err (!%p2509_p3)
}
 0x2b8   :  { %1797 = dma.vmem_to_hbm [thread:$0]  %s1792_s6, 2048, %s3234_s7, [#allocation4], %s2523_s1, %s2523_s1, %s2524_s25  }
 0x2b9   :  { %2517 = dma.done.wait [#allocation4], 2048  }
 0x2ba   :  { %2518 = vsyncadd [#allocation4], 4294965248 }
 0x2bb   :  { %1801 = vsyncpa [#allocation3], 1 }
 0x2bc   :  { %1802 = vsyncpa [#allocation6], 1 }
 0x2bd   :  { %1803 = vsyncpa [#allocation4], 1 }

</bundles_post_ra>
